<compile_context>
chip_gen: v7x
topology: tpu7x:2x2x1
jax: 0.10.0
libtpu: 0.0.40
codegen_flags: <defaults>
</compile_context>

<pallas_src>
import numpy as np
import jax
import jax.numpy as jnp
from jax.experimental import pallas as pl
from jax.experimental.pallas import tpu as pltpu

# --- torchaudio.transforms.Spectrogram(n_fft=256, win_length=128, hop_length=64) params ---
N_FFT = 256
WIN_LENGTH = 128          # hann window length; zero outside the centered 128 taps of the 256-frame
HOP = 64
FREQ_MAX = 100            # amp[1:freq_max, :] -> 99 freq bins kept downstream
N_BINS = 128              # lane-dense kernel freq dim; columns correspond to bins 1..128

# --- module target-downsampling hyperparams (frame_length=1, frame_shift=1.0, fsr=50) ---
FEATURE_SAMPLE_RATE = 50
TARGET_SIZE = int(1 * FEATURE_SAMPLE_RATE)        # 50
TARGET_SHIFT = 1.0 * FEATURE_SAMPLE_RATE          # 50.0
SEIZ_REQ = TARGET_SIZE // 5                       # 10


# ------------------------------- Pallas kernel --------------------------------
def spec_kernel(frames_ref, w_ref, out_ref):
    # frames_ref: [tm, 128] bf16, w_ref: [128, 256] bf16 (= [wcos | wsin])
    y = jnp.dot(frames_ref[...], w_ref[...],
                preferred_element_type=jnp.float32)        # [tm, 256] f32, one MXU pass
    real = y[:, :N_BINS]                                    # lane-aligned (128) slices: free
    imag = y[:, N_BINS:]
    power = real * real + imag * imag                       # |STFT|^2 (torchaudio power=2.0)
    out_ref[...] = jnp.log(power + 1e-10)                   # log(abs(power_spec) + 1e-10)


def _dft_bases():
    # hann(128, periodic=True); torch.stft centers it in n_fft=256 (offset 64), which we
    # bake into the phase so only the 128 non-zero taps are ever touched.
    n = np.arange(WIN_LENGTH)
    hann = 0.5 - 0.5 * np.cos(2.0 * np.pi * n / WIN_LENGTH)
    j = np.arange(WIN_LENGTH)[:, None]                 # tap index within the 128-tap window
    k = np.arange(1, N_BINS + 1)[None, :]              # frequency bins 1..128 (bin 0 unused)
    ang = 2.0 * np.pi * (j + (N_FFT - WIN_LENGTH) // 2) * k / N_FFT
    wcos = hann[:, None] * np.cos(ang)
    wsin = hann[:, None] * (-np.sin(ang))
    w = np.concatenate([wcos, wsin], axis=1).astype(np.float32)   # [128, 256]
    return jnp.asarray(w)


_W_BF16 = _dft_bases().astype(jnp.bfloat16)


def _choose_tile(M):
    # Largest tile up to 512 rows (multiple of 8); when M allows, keep >= 2 grid steps so
    # the M axis can shard across both TensorCores on v7x.
    half = (M + 1) // 2
    return min(512, max(8, ((half + 7) // 8) * 8))


def spectrogram_feature_pallas(frames):
    """frames: [M, 128] f32 (live window taps) -> log-power spectrogram [M, 128] f32."""
    M = frames.shape[0]
    tm = _choose_tile(M)
    m_pad = ((M + tm - 1) // tm) * tm
    frames = frames.astype(jnp.bfloat16)
    if m_pad != M:
        frames = jnp.pad(frames, ((0, m_pad - M), (0, 0)))
    out = pl.pallas_call(
        spec_kernel,
        out_shape=jax.ShapeDtypeStruct((m_pad, N_BINS), jnp.float32),
        grid_spec=pltpu.PrefetchScalarGridSpec(
            num_scalar_prefetch=0,
            grid=(m_pad // tm,),
            in_specs=[pl.BlockSpec((tm, WIN_LENGTH), lambda i: (i, 0)),
                      pl.BlockSpec((WIN_LENGTH, 2 * N_BINS), lambda i: (0, 0))],
            out_specs=pl.BlockSpec((tm, N_BINS), lambda i: (i, 0))),
        compiler_params=pltpu.CompilerParams(dimension_semantics=("parallel",)),
    )(frames, _W_BF16)
    return out[:M]


# ------------------------------- JAX / host glue --------------------------------
def frame_signals(signals):
    """signals: [C, T] -> frames [C, n_frames, 128] = the 128 taps under the non-zero window.

    torch.stft(center=True) reflect-pads by n_fft//2=128, but since the window is zero
    outside its centered 128 taps, a reflect pad of 64 yields identical values for every
    tap that is actually used.
    """
    pad = WIN_LENGTH // 2                                   # 64
    padded = jnp.pad(signals, ((0, 0), (pad, pad)), mode='reflect')
    T = signals.shape[1]
    n_frames = T // HOP + 1
    idx = (jnp.arange(n_frames) * HOP)[:, None] + jnp.arange(WIN_LENGTH)[None, :]
    return padded[:, idx], n_frames


def downsample_target(target_np):
    # mirrors SPECTROGRAM_FEATURE_HYPEROPT.downsample_target (host-side Python list)
    num_interval = int(target_np.shape[0] // TARGET_SHIFT) + 1
    out = []
    for i in range(num_interval):
        index = int(TARGET_SHIFT * i)
        seiz = int(np.count_nonzero(target_np[index:index + TARGET_SIZE]))
        out.append(0 if seiz < SEIZ_REQ else 1)
    return out


def forward(batch, targets, seq_lengths, target_lengths):
    """batch: [B, C, T] f32, targets: [B, L] int.
    Returns (features [B, 99, C*n_frames] f32 on device, list of per-sample target lists)."""
    B = batch.shape[0]
    targets_np = np.asarray(targets)                        # single host transfer for targets

    # Frame every sample, concatenate, and run ONE pallas_call over the whole batch.
    all_frames = []
    per_sample = []
    for idx in range(B):
        sig = batch[idx][:, :int(seq_lengths[idx])]
        frames, n_frames = frame_signals(sig)               # [C, nF, 128]
        C = sig.shape[0]
        per_sample.append((C, n_frames))
        all_frames.append(frames.reshape(C * n_frames, WIN_LENGTH))
    flat = jnp.concatenate(all_frames, axis=0)              # [sum(C*nF), 128]
    amp_all = spectrogram_feature_pallas(flat)              # [sum(C*nF), 128] log-power

    final_batch = []
    final_target_batch = []
    off = 0
    for idx in range(B):
        C, nF = per_sample[idx]
        amp = amp_all[off:off + C * nF].reshape(C, nF, N_BINS)[:, :, :FREQ_MAX - 1]  # bins 1..99
        off += C * nF
        # torch: stack -> [C, freq, time]; permute(1,0,2) -> [freq, C, time]; reshape(freq, -1)
        feat = jnp.transpose(amp, (2, 0, 1)).reshape(FREQ_MAX - 1, -1)
        final_batch.append(feat)
        tgt = targets_np[idx][:int(target_lengths[idx])]
        final_target_batch.append(downsample_target(tgt))

    # Like the reference's np.array(list) -> torch.tensor, this requires equal per-sample shapes.
    features = jnp.stack(final_batch).astype(jnp.float32)
    return features, final_target_batch


if __name__ == "__main__":
    key = jax.random.PRNGKey(0)
    B, C, T, L = 2, 4, 512, 200
    k1, k2 = jax.random.split(key)
    batch = jax.random.normal(k1, (B, C, T), dtype=jnp.float32)
    targets = (jax.random.uniform(k2, (B, L)) > 0.7).astype(jnp.int32)
    seq_lengths = [T, T]          # equal lengths so features stack (as np.array in reference)
    target_lengths = [L, L]

    feats, tgt_lists = forward(batch, targets, seq_lengths, target_lengths)
    feats = jax.block_until_ready(feats)

    n_frames = T // HOP + 1
    assert feats.shape == (B, FREQ_MAX - 1, C * n_frames), feats.shape
    assert feats.dtype == jnp.float32
    assert len(tgt_lists) == B and len(tgt_lists[0]) == L // TARGET_SIZE + 1
    assert bool(jnp.all(jnp.isfinite(feats)))
    print("KERNEL_OK")
</pallas_src>

<mosaic_0001>
module attributes {stable_mosaic.version = 11 : i64} {
  func.func @spec_kernel(%arg0: i32, %arg1: memref<40x128xbf16, #tpu.memory_space<vmem>>, %arg2: memref<128x256xbf16, #tpu.memory_space<vmem>>, %arg3: memref<40x128xf32, #tpu.memory_space<vmem>>) attributes {dimension_semantics = [#tpu.dimension_semantics<parallel>], iteration_bounds = array<i64: 2>, scalar_prefetch = 0 : i64, scratch_operands = 0 : i64, tpu.core_type = #tpu.core_type<tc>, window_params = [{transform_indices = @transform_0, window_bounds = array<i64: 40, 128>}, {pipeline_mode = #tpu.pipeline_mode<synchronous>, transform_indices = @transform_1, window_bounds = array<i64: 128, 256>}, {transform_indices = @transform_2, window_bounds = array<i64: 40, 128>}]} {
    %c0 = arith.constant 0 : index
    %c0_0 = arith.constant 0 : index
    %0 = vector.load %arg1[%c0, %c0_0] : memref<40x128xbf16, #tpu.memory_space<vmem>>, vector<40x128xbf16>
    %c0_1 = arith.constant 0 : index
    %c0_2 = arith.constant 0 : index
    %1 = vector.load %arg2[%c0_1, %c0_2] : memref<128x256xbf16, #tpu.memory_space<vmem>>, vector<128x256xbf16>
    %cst = arith.constant dense<0.000000e+00> : vector<40x256xf32>
    %2 = tpu.matmul %0, %1, %cst {dimension_numbers = #tpu.dot_dimension_numbers<[1], [0], [0], [1], [0, 0, 1, 1], [], []>} : vector<40x128xbf16>, vector<128x256xbf16>, vector<40x256xf32> -> vector<40x256xf32>
    %3 = vector.extract_strided_slice %2 {offsets = [0, 0], sizes = [40, 128], strides = [1, 1]} : vector<40x256xf32> to vector<40x128xf32>
    %4 = vector.extract_strided_slice %2 {offsets = [0, 128], sizes = [40, 128], strides = [1, 1]} : vector<40x256xf32> to vector<40x128xf32>
    %5 = arith.mulf %3, %3 : vector<40x128xf32>
    %6 = arith.mulf %4, %4 : vector<40x128xf32>
    %7 = arith.addf %5, %6 : vector<40x128xf32>
    %cst_3 = arith.constant 1.000000e-10 : f32
    %8 = vector.broadcast %cst_3 : f32 to vector<40x128xf32>
    %9 = arith.addf %7, %8 : vector<40x128xf32>
    %10 = math.log %9 : vector<40x128xf32>
    %c0_4 = arith.constant 0 : index
    %c0_5 = arith.constant 0 : index
    %11 = vector.load %arg3[%c0_4, %c0_5] : memref<40x128xf32, #tpu.memory_space<vmem>>, vector<40x128xf32>
    tpu.vector_store %arg3[%c0_4, %c0_5], %10 {strides = array<i32>} : memref<40x128xf32, #tpu.memory_space<vmem>>, vector<40x128xf32>,
    return
  }
  func.func @transform_0(%arg0: i32) -> (i32, i32) {
    %c0_i32 = arith.constant 0 : i32
    %c0_i32_0 = arith.constant 0 : i32
    return %arg0, %c0_i32 : i32, i32
  }
  func.func @transform_1(%arg0: i32) -> (i32, i32) {
    %c0_i32 = arith.constant 0 : i32
    %c0_i32_0 = arith.constant 0 : i32
    %c0_i32_1 = arith.constant 0 : i32
    return %c0_i32, %c0_i32_0 : i32, i32
  }
  func.func @transform_2(%arg0: i32) -> (i32, i32) {
    %c0_i32 = arith.constant 0 : i32
    %c0_i32_0 = arith.constant 0 : i32
    return %arg0, %c0_i32 : i32, i32
  }
}

</mosaic_0001>

<bundles_post_ra>
// kernel: tpu_custom_call.1
= control target key start
LH: loop header
LB: loop body
LE: loop exit
PB: predicated region body
PF: predicated region fallthrough
CT: control target
= control target key end

     0   :  { %7 = vsyncpa [#allocation3], 0  ;;  %s1003_s0 = inlined_call_operand.hbm [shape: bf16[80,128], index: 0, kind: input, shape index: {}]   ;;  %s1004_s1 = inlined_call_operand.hbm [shape: bf16[128,256], index: 1, kind: input, shape index: {}]   ;;  %s1005_s2 = inlined_call_operand.hbm [shape: f32[80,128], index: 2, kind: output, shape index: {}]  }
   0x1   :  { %9 = vsyncpa [#allocation3 + $0x1], 0 }
   0x2   :  { %10 = vsyncpa [#allocation6], 0 }
   0x3   :  { %11 = vsyncpa [#allocation4], 0 }
   0x4   :  { %13 = vsyncpa [#allocation4 + $0x1], 0  ;;  %s796_s9 = smov 0   ;;  %s798_s10 = smov 0  }
   0x5   :  { %s800_s11 = smov 0   ;;  %s802_s12 = smov 0  }
   0x6 LB: > { %s817_s13 = sadd.s32 4294967295, %s769_s12   ;;  %s490_s14 = sadd.s32 4294967294, %s769_s12   ;;  %s769_s12 = sphi %s802_s12, %s1025_s12   ;;  %s765_s11 = sphi %s800_s11, %s1024_s11   ;;  %s761_s10 = sphi %s798_s10, %s1023_s10   ;;  %s757_s9 = sphi %s796_s9, %s1022_s9  }
   0x7   : > { %p39_p0 = scmp.ne.s32.totalorder %s761_s10, %s757_s9  ;;  %p1006_p1 = scmp.eq.s32.totalorder %s817_s13, 0 }
   0x8   : > { %p90_p3 = scmp.eq.s32.totalorder %s490_s14, 1  ;;  %p491_p5 = scmp.ge.s32.totalorder %s769_s12, 1 }
   0x9   : > { %p826_p4 = por %p1006_p1, %p39_p0  ;;  %p97_p7 = scmp.lt.s32.totalorder %s769_s12, 3 }
   0xa   : > { %p831_p6 = por %p90_p3, %p39_p0  ;;  %s771_s18 = smov [#allocation5]  }
   0xb   : > { %s1009_s15 = scalar_select %p826_p4, 1, 0 }
   0xc   : > { %s1010_s16 = scalar_select %p831_p6, 1, 0 }
   0xd   : > { %p836_p8 = pnand %p491_p5, %p97_p7  ;;  %s109_s19 = sshll.u32 %s771_s18, 4  ;;  %s840_s19 = int_to_ptr.vmem [resolvable:$true] %s109_s19 }
   0xe   : > { %s852_s21 = sadd.s32 1, %s769_s12   ;;  %s26_s22 = sadd.s32 1, %s765_s11 }
   0xf   : > { %s1011_s17 = scalar_select %p836_p8, 1, 0 }
  0x10   : > { %p548_p9 = pneg %p836_p8  ;;  %s23_s23 = ssub.s32 %s769_s12, %s852_s21 }
  0x11   : > { %s641_s26 = scalar_lea.hbm %s1004_s1, 2048 }
  0x12   : > { %p847_p11 = pnand %p548_p9, %p1006_p1  ;;  %p642_p12 = scmp.ne.s32.totalorder %s1004_s1, %s641_s26 }
  0x13   : > { %p648_p5 = scmp.lt.u32.totalorder %s641_s26, %s1004_s1 }
  0x14   : > { %p643_p13 = pneg %p847_p11 }
  0x16   : > { %p644_p0 = pnand %p643_p13, %p642_p12 }
  0x18   : > { %p645_p3 = pneg %p644_p0 }
  0x1a   : > { %p650_p7 = pnand %p648_p5, %p645_p3 }
  0x1c   : > { %653 = shalt.err (!%p650_p7)
}
  0x1d   : > { %s654_s3 = scalar_lea.vmem %s840_s19, 2048  ;;  %p662_p2 = scmp.lt.s32.totalorder %s840_s19, %s840_s19 }
  0x1e   : > { %p655_p9 = scmp.ne.s32.totalorder %s840_s19, %s654_s3  ;;  %p663_p6 = scmp.lt.s32.totalorder %s654_s3, %s654_s3 }
  0x20   : > { %p657_p10 = pnand %p655_p9, %p643_p13  ;;  %p664_p4 = por %p663_p6, %p662_p2 }
  0x22   : > { %p658_p1 = pneg %p657_p10 }
  0x24   : > { %p665_p8 = pnand %p664_p4, %p658_p1 }
  0x26   : > { %668 = shalt.err (!%p665_p8)
}
  0x27   : > { %s772_s4 = smov 128   ;;  %s773_s5 = smov 8  }
  0x28   : > { %551 = dma.hbm_to_vmem [thread:$0]  (!%p847_p11), %s1004_s1, 2048, %s840_s19, [#allocation6], %s772_s4, %s772_s4, %s773_s5  }
  0x29   : > { %p24_p2 = scmp.eq.s32.totalorder %s23_s23, 0  ;;  %p33_p1 = scmp.ne.s32.totalorder %s765_s11, %s761_s10 }
  0x2a   : > { %p34_p4 = scmp.eq.s32.totalorder %s769_s12, 0  ;;  %p561_p6 = scmp.lt.s32.totalorder %s769_s12, 2 }
  0x2b   : > { %s883_s8 = scalar_select %p24_p2, %s765_s11, %s26_s22  }
  0x2c   : > { %p35_p8 = por %p34_p4, %p33_p1  ;;  %p1013_p10 = scmp.eq.s32.totalorder %s817_s13, 1 }
  0x2d   : > { %s123_s18 = sand.u32 1, %s765_s11   ;;  %s519_s24 = smul.u32 320, %s769_s12 }
  0x2e   : > { %p887_p12 = por %p1013_p10, %p33_p1  ;;  %s537_s25 = smul.u32 20, %s123_s18 }
  0x2f   : > { %s896_s27 = scalar_lea.hbm %s1003_s0, %s519_s24  ;;  %p898_p11 = pnand %p561_p6, %p35_p8 }
  0x30   : > { %s127_s22 = scalar_lea.vmem [#allocation2], %s537_s25  ;;  %s904_s28 = scalar_lea.sflag [#allocation3], %s123_s18 }
  0x31   : > { %s134_s23 = sshll.u32 %s127_s22, 4  ;;  %s669_s29 = scalar_lea.hbm %s896_s27, 320  ;;  %s902_s23 = int_to_ptr.vmem [resolvable:$true] %s134_s23 }
  0x32   : > { %p670_p13 = scmp.ne.s32.totalorder %s896_s27, %s669_s29  ;;  %p671_p0 = pneg %p898_p11 }
  0x33   : > { %s674_s4 = scalar_lea.hbm %s1003_s0, 640  ;;  %p675_p7 = scmp.lt.u32.totalorder %s896_s27, %s1003_s0 }
  0x34   : > { %p672_p3 = pnand %p671_p0, %p670_p13  ;;  %p676_p9 = scmp.lt.u32.totalorder %s674_s4, %s669_s29 }
  0x35   : > { %p678_p1 = scmp.lt.u32.totalorder %s669_s29, %s896_s27 }
  0x36   : > { %p673_p5 = pneg %p672_p3  ;;  %p677_p2 = por %p676_p9, %p675_p7 }
  0x38   : > { %p679_p4 = por %p678_p1, %p677_p2 }
  0x3a   : > { %p680_p6 = pnand %p679_p4, %p673_p5 }
  0x3c   : > { %683 = shalt.err (!%p680_p6)
}
  0x3d   : > { %s684_s7 = scalar_lea.vmem %s902_s23, 320  ;;  %s774_s18 = smov [#allocation2]  }
  0x3e   : > { %p685_p8 = scmp.ne.s32.totalorder %s902_s23, %s684_s7  ;;  %s689_s24 = sshll.u32 %s774_s18, 4  ;;  %s690_s24 = int_to_ptr.vmem [resolvable:$false] %s689_s24 }
  0x3f   : > { %s691_s25 = scalar_lea.vmem %s690_s24, 640  ;;  %p692_p3 = scmp.lt.s32.totalorder %s902_s23, %s690_s24 }
  0x40   : > { %p687_p10 = pnand %p685_p8, %p671_p0  ;;  %p693_p7 = scmp.lt.s32.totalorder %s691_s25, %s684_s7 }
  0x42   : > { %p688_p13 = pneg %p687_p10  ;;  %p694_p9 = por %p693_p7, %p692_p3 }
  0x44   : > { %p695_p2 = pnand %p694_p9, %p688_p13 }
  0x46   : > { %698 = shalt.err (!%p695_p2)
}
  0x47   : > { %s775_s20 = smov 64   ;;  %s776_s26 = smov 4  }
  0x48   : > { %555 = dma.hbm_to_vmem [thread:$0]  (!%p898_p11), %s896_s27, 320, %s902_s23, %s904_s28, %s775_s20, %s775_s20, %s776_s26  }
  0x49   : > { %p1016_p0 = scmp.ne.s32.totalorder %s1011_s17, 0 }
  0x4a   : > { %s935_s22 = sand.u32 (!%p1016_p0), 1, %s761_s10   ;;  %p1017_p5 = scmp.ne.s32.totalorder (!%p1016_p0), %s1009_s15, 0 }
  0x4b   : > { %146 = sbr.rel (%p1016_p0) target bundleno = 375 (0x177), region = 28  ;;  %s149_s30 = scalar_lea.sflag (!%p1016_p0), [#allocation3], %s935_s22 }
  0x4c   : > { %s538_s29 = smul.u32 (!%p1016_p0), 20, %s935_s22 }
  0x4e   : > { %s939_s3 = scalar_lea.vmem (!%p1016_p0), [#allocation2], %s538_s29 }
  0x52   : > { %744 = dma.done.wait (%p1017_p5), %s149_s30, 320  }
  0x53   : > { %746 = vsyncadd (%p1017_p5), %s149_s30, 4294966976  ;;  %p1018_p11 = scmp.eq.s32.totalorder %s817_s13, 0 }
  0x55   : > { %748 = dma.done.wait (%p1018_p11), [#allocation6], 2048   ;;  %p1019_p1 = pmov %p1018_p11 }
  0x56   : > { %v777_v0 = vmov 0   ;;  %v604_v1 = vld [vmem:[#allocation5 + $0x4] ss:$8 sps:$4 sm:$0xff]   ;;  %v606_v2 = vld [vmem:[#allocation5] ss:$8 sps:$4 sm:$0xff]   ;;  %s539_s15 = smul.u32 40, %s935_s22 }
  0x57   : > { %750 = vsyncadd (%p1019_p1), [#allocation6], 4294965248  ;;  %339 = vmatprep.mubr.bf16.mxu1 %v777_v0  ;;  %329 = vmatprep.mubr.bf16.mxu0 %v777_v0  ;;  %v607_v3 = vld [vmem:[#allocation5 + $0x14] ss:$8 sps:$4 sm:$0xff]   ;;  %v609_v4 = vld [vmem:[#allocation5 + $0x10] ss:$8 sps:$4 sm:$0xff]  }
  0x58   : > { %521 = vmatprep.subr.bf16.mxu1 %v604_v1  ;;  %297 = vmatprep.subr.bf16.mxu0 %v604_v1  ;;  %v610_v5 = vld [vmem:[#allocation5 + $0x24] ss:$8 sps:$4 sm:$0xff]   ;;  %v612_v6 = vld [vmem:[#allocation5 + $0x20] ss:$8 sps:$4 sm:$0xff]   ;;  %v613_v7 = vld [vmem:[#allocation5 + $0x34] ss:$8 sps:$4 sm:$0xff]  }
  0x59   : > { %529 = vmatpush1.bf16.msra.mxu1 %v606_v2  ;;  %298 = vmatpush1.bf16.msra.mxu0 %v606_v2  ;;  %v615_v8 = vld [vmem:[#allocation5 + $0x30] ss:$8 sps:$4 sm:$0xff]   ;;  %v616_v9 = vld [vmem:[#allocation5 + $0x44] ss:$8 sps:$4 sm:$0xff]   ;;  %v618_v10 = vld [vmem:[#allocation5 + $0x40] ss:$8 sps:$4 sm:$0xff]  }
  0x5a   : > { %522 = vmatprep.subr.bf16.mxu1 %v607_v3  ;;  %299 = vmatprep.subr.bf16.mxu0 %v607_v3  ;;  %v619_v11 = vld [vmem:[#allocation5 + $0x54] ss:$8 sps:$4 sm:$0xff]   ;;  %v621_v12 = vld [vmem:[#allocation5 + $0x50] ss:$8 sps:$4 sm:$0xff]   ;;  %v622_v13 = vld [vmem:[#allocation5 + $0x64] ss:$8 sps:$4 sm:$0xff]  }
  0x5b   : > { %v624_v14 = vld [vmem:[#allocation5 + $0x60] ss:$8 sps:$4 sm:$0xff]   ;;  %v625_v15 = vld [vmem:[#allocation5 + $0x74] ss:$8 sps:$4 sm:$0xff]   ;;  %v627_v16 = vld [vmem:[#allocation5 + $0x70] ss:$8 sps:$4 sm:$0xff]  }
  0x5c   : > { %v628_v17 = vld [vmem:[%s939_s3 + $0x8] sm:$0xff]   ;;  %v629_v18 = vld [vmem:[%s939_s3] sm:$0xff]   ;;  %v630_v19 = vld [vmem:[%s939_s3 + $0x10] ss:$0 sps:$4 sm:$0xff]   ;;  %s176_s17 = scalar_lea.vmem [#allocation7], %s539_s15  ;;  %s520_s19 = smul.u32 640, %s817_s13 }
  0x5d   : > { %530 = vmatpush1.bf16.msra.mxu1 %v609_v4  ;;  %300 = vmatpush1.bf16.msra.mxu0 %v609_v4  ;;  %s407_s27 = sshll.u32 %s176_s17, 4  ;;  %s394_s5 = scalar_lea.sflag [#allocation4], %s935_s22  ;;  %s954_s27 = int_to_ptr.vmem [resolvable:$true] %s407_s27 }
  0x5e   : > { %523 = vmatprep.subr.bf16.mxu1 %v610_v5  ;;  %301 = vmatprep.subr.bf16.mxu0 %v610_v5  ;;  %s959_s4 = scalar_lea.hbm %s1005_s2, %s520_s19  ;;  %s699_s6 = scalar_lea.vmem %s954_s27, 640 }
  0x5f   : > { %p700_p4 = scmp.ne.s32.totalorder %s954_s27, %s699_s6  ;;  %s778_s13 = smov [#allocation7]  }
  0x60   : > { %s703_s7 = sshll.u32 %s778_s13, 4  ;;  %s704_s7 = int_to_ptr.vmem [resolvable:$false] %s703_s7 }
  0x61   : > { %531 = vmatpush1.bf16.msra.mxu1 %v612_v6  ;;  %302 = vmatpush1.bf16.msra.mxu0 %v612_v6  ;;  %p701_p6 = pnand %p700_p4, %p887_p12  ;;  %s705_s18 = scalar_lea.vmem %s704_s7, 1280 }
  0x62   : > { %524 = vmatprep.subr.bf16.mxu1 %v613_v7  ;;  %303 = vmatprep.subr.bf16.mxu0 %v613_v7  ;;  %p706_p10 = scmp.lt.s32.totalorder %s954_s27, %s704_s7  ;;  %p707_p13 = scmp.lt.s32.totalorder %s705_s18, %s699_s6 }
  0x63   : > { %p702_p8 = pneg %p701_p6 }
  0x64   : > { %p708_p3 = por %p707_p13, %p706_p10 }
  0x65   : > { %532 = vmatpush1.bf16.msra.mxu1 %v615_v8  ;;  %304 = vmatpush1.bf16.msra.mxu0 %v615_v8 }
  0x66   : > { %525 = vmatprep.subr.bf16.mxu1 %v616_v9  ;;  %305 = vmatprep.subr.bf16.mxu0 %v616_v9  ;;  %p709_p7 = pnand %p708_p3, %p702_p8 }
  0x69   : > { %533 = vmatpush1.bf16.msra.mxu1 %v618_v10  ;;  %306 = vmatpush1.bf16.msra.mxu0 %v618_v10 }
  0x6a   : > { %526 = vmatprep.subr.bf16.mxu1 %v619_v11  ;;  %307 = vmatprep.subr.bf16.mxu0 %v619_v11 }
  0x6d   : > { %534 = vmatpush1.bf16.msra.mxu1 %v621_v12  ;;  %308 = vmatpush1.bf16.msra.mxu0 %v621_v12 }
  0x6e   : > { %527 = vmatprep.subr.bf16.mxu1 %v622_v13  ;;  %309 = vmatprep.subr.bf16.mxu0 %v622_v13 }
  0x71   : > { %535 = vmatpush1.bf16.msra.mxu1 %v624_v14  ;;  %310 = vmatpush1.bf16.msra.mxu0 %v624_v14 }
  0x72   : > { %528 = vmatprep.subr.bf16.mxu1 %v625_v15  ;;  %311 = vmatprep.subr.bf16.mxu0 %v625_v15 }
  0x75   : > { %536 = vmatpush1.bf16.msra.mxu1 %v627_v16  ;;  %312 = vmatpush1.bf16.msra.mxu0 %v627_v16 }
  0x78   : > { %340 = vmatmul.mubr.bf16.vlgmr.msra.gmra.mrb[0].mxu1 %v628_v17  ;;  %330 = vmatmul.mubr.bf16.vlgmr.msra.gmra.mrb[0].mxu0 %v629_v18 }
  0x79   : > { %349 = vmatprep.mubr.bf16.mxu1 %v777_v0 }
  0x80   : > { %350 = vmatmul.mubr.bf16.gmra.mrb[4].mxu1 %v630_v19 }
 0x14b   : > { %v341_v20 = vpop.f32.mrb[0].mxu1  ;;  %v331_v21 = vpop.f32.mrb[0].mxu0 }
 0x14c   : > { %v360_v22 = vmul.f32 %v341_v20, %v341_v20  ;;  %v343_v23 = vpop.f32.mrb[1].mxu1  ;;  %v358_v24 = vmul.f32 %v331_v21, %v331_v21  ;;  %v333_v25 = vpop.f32.mrb[1].mxu0 }
 0x14d   : > { %v365_v26 = vmul.f32 %v343_v23, %v343_v23  ;;  %v345_v27 = vpop.f32.mrb[2].mxu1  ;;  %v363_v28 = vmul.f32 %v333_v25, %v333_v25  ;;  %v335_v29 = vpop.f32.mrb[2].mxu0 }
 0x14e   : > { %v361_v30 = vmul.f32 %v345_v27, %v345_v27  ;;  %v347_v31 = vpop.f32.mrb[3].mxu1  ;;  %v359_v32 = vmul.f32 %v335_v29, %v335_v29  ;;  %v337_v33 = vpop.f32.mrb[3].mxu0 }
 0x14f   : > { %v370_v34 = vadd.f32 %v365_v26, %v360_v22  ;;  %v366_v35 = vmul.f32 %v347_v31, %v347_v31  ;;  %v368_v36 = vadd.f32 %v363_v28, %v358_v24  ;;  %v364_v37 = vmul.f32 %v337_v33, %v337_v33 }
 0x151   : > { %v375_v38 = vadd.f32 1e-10, %v370_v34  ;;  %v371_v39 = vadd.f32 %v366_v35, %v361_v30  ;;  %v373_v40 = vadd.f32 1e-10, %v368_v36  ;;  %v369_v41 = vadd.f32 %v364_v37, %v359_v32 }
 0x153   : > { %631 = vlog2.f32 %v375_v38  ;;  %v376_v42 = vadd.f32 1e-10, %v371_v39  ;;  %v374_v43 = vadd.f32 1e-10, %v369_v41  ;;  %v351_v44 = vpop.f32.mrb[4].mxu1 }
 0x154   : > { %633 = vlog2.f32 %v373_v40  ;;  %v362_v45 = vmul.f32 %v351_v44, %v351_v44  ;;  %v353_v46 = vpop.f32.mrb[5].mxu1 }
 0x155   : > { %635 = vlog2.f32 %v376_v42  ;;  %v367_v47 = vmul.f32 %v353_v46, %v353_v46  ;;  %v355_v48 = vpop.f32.mrb[6].mxu1 }
 0x156   : > { %637 = vlog2.f32 %v374_v43  ;;  %v356_v49 = vpop.f32.mrb[7].mxu1 }
 0x157   : > { %v372_v50 = vadd.f32 %v367_v47, %v362_v45 }
 0x159   : > { %v377_v51 = vadd.f32 1e-10, %v372_v50 }
 0x15b   : > { %639 = vlog2.f32 %v377_v51 }
 0x15d   : > { %v632_v52 = vpop.eup %631 }
 0x15e   : > { %v634_v53 = vpop.eup %633  ;;  %v383_v54 = vmul.f32 0.6931472, %v632_v52 }
 0x15f   : > { %v636_v55 = vpop.eup %635  ;;  %v379_v56 = vmul.f32 0.6931472, %v634_v53 }
 0x160   : > { %v638_v57 = vpop.eup %637  ;;  %390 = vst [vmem:[%s176_s17 + $0x10] sm:$0xff] %v383_v54  ;;  %v385_v58 = vmul.f32 0.6931472, %v636_v55 }
 0x161   : > { %388 = vst [vmem:[%s176_s17] sm:$0xff] %v379_v56  ;;  %v381_v59 = vmul.f32 0.6931472, %v638_v57 }
 0x162   : > { %391 = vst [vmem:[%s176_s17 + $0x18] sm:$0xff] %v385_v58 }
 0x163   : > { %389 = vst [vmem:[%s176_s17 + $0x8] sm:$0xff] %v381_v59 }
 0x165   : > { %v640_v60 = vpop.eup %639 }
 0x166   : > { %v387_v61 = vmul.f32 0.6931472, %v640_v60 }
 0x168   : > { %392 = vst [vmem:[%s176_s17 + $0x20] sm:$0xff] %v387_v61 }
 0x169   : > { %712 = shalt.err (!%p709_p7)
}
 0x16a   : > { %s713_s24 = scalar_lea.hbm %s959_s4, 640  ;;  %s717_s26 = scalar_lea.hbm %s1005_s2, 1280 }
 0x16b   : > { %p714_p9 = scmp.ne.s32.totalorder %s959_s4, %s713_s24  ;;  %p718_p5 = scmp.lt.u32.totalorder %s959_s4, %s1005_s2 }
 0x16c   : > { %p719_p11 = scmp.lt.u32.totalorder %s717_s26, %s713_s24  ;;  %p721_p4 = scmp.lt.u32.totalorder %s713_s24, %s959_s4 }
 0x16d   : > { %p715_p2 = pnand %p714_p9, %p887_p12 }
 0x16e   : > { %p720_p1 = por %p719_p11, %p718_p5 }
 0x16f   : > { %p716_p0 = pneg %p715_p2 }
 0x170   : > { %p722_p6 = por %p721_p4, %p720_p1 }
 0x172   : > { %p723_p8 = pnand %p722_p6, %p716_p0 }
 0x174   : > { %726 = shalt.err (!%p723_p8)
}
 0x175   : > { %s779_s3 = smov 128   ;;  %s780_s15 = smov 8  }
 0x176   : > { %546 = dma.vmem_to_hbm [thread:$0]  (%p887_p12), %s954_s27, 640, %s959_s4, %s394_s5, %s779_s3, %s779_s3, %s780_s15  }
 0x177 PF: > { %s422_s17 = sand.u32 1, %s757_s9   ;;  %p1020_p10 = scmp.ne.s32.totalorder %s1010_s16, 0 }
 0x178   : > { %p1021_p13 = scmp.ge.s32.totalorder %s769_s12, 2  ;;  %s423_s19 = scalar_lea.sflag [#allocation4], %s422_s17 }
 0x17a   : > { %p557_p3 = pnand %p1021_p13, %p1020_p10 }
 0x17c   : > { %752 = dma.done.wait (!%p557_p3), %s423_s19, 640  }
 0x17d   : > { %754 = vsyncadd (!%p557_p3), %s423_s19, 4294966656  ;;  %p16_p7 = scmp.ge.s32.totalorder %s852_s21, 4   ;;  %s1022_s9 = smov %s761_s10 }
 0x17e   : > { %s1023_s10 = smov %s765_s11  ;;  %s1024_s11 = smov %s883_s8 }
 0x17f   : > { %s1025_s12 = smov %s852_s21  ;;  %18 = sbr.rel (!%p16_p7) target bundleno = 6 (0x6), region = 77 }
 0x186   :  { %428 = vsyncpa [#allocation3], 1 }
 0x187   :  { %430 = vsyncpa [#allocation3 + $0x1], 1 }
 0x188   :  { %431 = vsyncpa [#allocation6], 1 }
 0x189   :  { %432 = vsyncpa [#allocation4], 1 }
 0x18a   :  { %434 = vsyncpa [#allocation4 + $0x1], 1 }

</bundles_post_ra>
